<compile_context>
chip_gen: v6e
topology: v6e:2x2x1
jax: 0.10.0
libtpu: 0.0.40
codegen_flags: <defaults>
</compile_context>

<pallas_src>
import jax
import jax.numpy as jnp
from jax.experimental import pallas as pl
from jax.experimental.pallas import tpu as pltpu

_LANE = 128                      # TPU lane width
_SUBLANE = 8                     # TPU sublane count (f32)
_NEG_BIG = -1e30                 # padded-label bias -> exp underflows to exactly 0 in f32
_VMEM_BUDGET = 12 * 1024 * 1024  # per-step VMEM budget, under every generation's scoped default
_TB_CAP = 2048                   # batch-tile cap


def _round_up(x, m):
    return ((x + m - 1) // m) * m


def _classifier_softmax_kernel(x_ref, w_ref, b_ref, out_ref):
    """Fused [CLS]-head linear + softmax over one batch tile.

    x_ref  : (TB, H)  pooled [CLS] embeddings, float32   (VMEM)
    w_ref  : (H, Lp)  classifier weight (transposed, label-padded), bfloat16
    b_ref  : (1, Lp)  classifier bias (padded with -1e30), float32
    out_ref: (TB, Lp) softmax probabilities, float32
    """
    # cast in-kernel (VPU) so the HBM DMA stays a single f32 read of the CLS slab
    x = x_ref[...].astype(jnp.bfloat16)
    # bf16 x bf16 -> f32 accumulation on the MXU
    logits = jnp.dot(x, w_ref[...], preferred_element_type=jnp.float32) + b_ref[...]

    # numerically-stable, exact softmax along the lane-dense padded label axis
    m = jnp.max(logits, axis=-1, keepdims=True)
    e = jnp.exp(logits - m)
    denom = jnp.sum(e, axis=-1, keepdims=True)
    out_ref[...] = (e / denom).astype(out_ref.dtype)


def _pick_batch_tile(batch, hidden, lp):
    """Batch tile: multiple of 8, fits the VMEM budget, >= 2 grid steps when possible."""
    if batch <= _SUBLANE:
        return batch                                   # single block == full batch extent
    per_row = 2 * hidden * 4 + 2 * lp * 4              # f32 x + f32 out, double-buffered
    resident = 2 * (hidden * lp * 2 + lp * 4)          # bf16 weight + f32 bias (worst case)
    tb_budget = max(_SUBLANE,
                    ((_VMEM_BUDGET - resident) // per_row) // _SUBLANE * _SUBLANE)
    # keep at least 2 grid steps so the "parallel" axis can shard across v7x's 2 TCs
    tb_two_steps = max(_SUBLANE, _round_up(-(-batch // 2), _SUBLANE))
    return min(_TB_CAP, tb_budget, tb_two_steps)


def classifier_softmax(x2d, hidden, weight_t, bias_padded, label_num):
    """x2d: (B, W) float32 whose first `hidden` columns are the [CLS] embedding
    (W == hidden for the pre-sliced path, W == S*hidden for the fused-slice path).
    Returns softmax probabilities (B, label_num) float32."""
    B, W = x2d.shape
    Hw, Lp = weight_t.shape
    assert Hw == hidden and W >= hidden and Lp % _LANE == 0
    # fused-slice path needs a lane-aligned hidden size
    assert W == hidden or hidden % _LANE == 0

    TB = _pick_batch_tile(B, hidden, Lp)
    grid = (pl.cdiv(B, TB),)

    probs_padded = pl.pallas_call(
        _classifier_softmax_kernel,
        out_shape=jax.ShapeDtypeStruct((B, Lp), jnp.float32),
        grid=grid,
        in_specs=[
            # batch tile streams; column-block 0 pulls only cols [0:hidden] (the CLS slab)
            pl.BlockSpec((TB, hidden), lambda i: (i, 0)),
            pl.BlockSpec((Hw, Lp), lambda i: (0, 0)),   # weight stays VMEM-resident
            pl.BlockSpec((1, Lp), lambda i: (0, 0)),    # bias stays VMEM-resident
        ],
        out_specs=pl.BlockSpec((TB, Lp), lambda i: (i, 0)),
        compiler_params=pltpu.CompilerParams(
            dimension_semantics=("parallel",),
        ),
    )(x2d, weight_t, bias_padded)

    # only the label-column slice is materialized; no row padding was added
    return probs_padded[:, :label_num]


class FastR2D2IterClassificationPallas:
    """Inference-mode forward of FastR2D2IterClassification (classification head)."""

    def __init__(self, hidden_size, label_num, key):
        self.hidden_size = hidden_size
        self.label_num = label_num
        k_w, k_b = jax.random.split(key)

        # nn.Linear(hidden_size, label_num): weight (L, H), bias (L,)
        bound = hidden_size ** -0.5
        self.weight = jax.random.uniform(
            k_w, (label_num, hidden_size), jnp.float32, -bound, bound
        )
        self.bias_raw = jax.random.uniform(
            k_b, (label_num,), jnp.float32, -bound, bound
        )

        # lane-dense padded label axis for the kernel
        lp = _round_up(max(label_num, 1), _LANE)
        weight_t = jnp.zeros((hidden_size, lp), jnp.bfloat16)
        weight_t = weight_t.at[:, :label_num].set(self.weight.T.astype(jnp.bfloat16))
        self.weight_t = weight_t                                   # (H, Lp) bf16

        # NOTE: keep this bias/logits path in f32; -1e30 overflows bf16 to -inf.
        bias_padded = jnp.full((1, lp), _NEG_BIG, jnp.float32)
        bias_padded = bias_padded.at[0, :label_num].set(self.bias_raw)
        self.bias_padded = bias_padded                             # (1, Lp) f32

    def forward(self, contextualized_outputs):
        """contextualized_outputs: (B, S, H) -> {'predict': (B, L) softmax probs}.

        Mirrors: pooling = outputs[:, 0, :]; logits = classifier(pooling);
                 return {'predict': F.softmax(logits, dim=-1)}
        """
        B, S, H = contextualized_outputs.shape
        if H % _LANE == 0:
            # free contiguous reshape; the kernel's BlockSpec DMAs only the CLS slab
            x2d = contextualized_outputs.reshape(B, S * H)
        else:
            # TODO(synk): H not lane-aligned -> the [CLS] slice stays a JAX glue op
            x2d = contextualized_outputs[:, 0, :]
        probs = classifier_softmax(
            x2d, H, self.weight_t, self.bias_padded, self.label_num
        )
        return {"predict": probs}


if __name__ == "__main__":
    key = jax.random.PRNGKey(0)
    k_model, k_x = jax.random.split(key)

    # small shapes; H lane-aligned so the fused [CLS]-slice DMA path is exercised,
    # and B/TB gives a 2-step "parallel" grid.
    B, S, H, LABELS = 16, 8, 128, 4

    model = FastR2D2IterClassificationPallas(H, LABELS, k_model)

    # stand-in for the R2D2 contextualized inside-outside encoder outputs
    outputs = jax.random.normal(k_x, (B, S, H), dtype=jnp.float32)

    result = model.forward(outputs)
    probs = jax.block_until_ready(result["predict"])
    assert probs.shape == (B, LABELS)

    # pure-JAX reference using the same bf16-quantized operands, exact softmax
    x_ref = outputs[:, 0, :].astype(jnp.bfloat16).astype(jnp.float32)
    w_ref = model.weight.T.astype(jnp.bfloat16).astype(jnp.float32)
    logits_ref = x_ref @ w_ref + model.bias_raw
    probs_ref = jax.nn.softmax(logits_ref, axis=-1)

    # exact divide in the kernel -> rows sum to 1 within f32 rounding
    row_sums = jnp.sum(probs, axis=-1)
    assert bool(jnp.all(jnp.abs(row_sums - 1.0) < 1e-4))
    # bf16 MXU quantization -> ~1e-2 level agreement with the f32 reference
    assert bool(jnp.max(jnp.abs(probs - probs_ref)) < 2e-2)

    print("KERNEL_OK")
</pallas_src>

<mosaic_0001>
module attributes {stable_mosaic.version = 11 : i64} {
  func.func @_classifier_softmax_kernel(%arg0: i32, %arg1: memref<8x128xf32, #tpu.memory_space<vmem>>, %arg2: memref<128x128xbf16, #tpu.memory_space<vmem>>, %arg3: memref<1x128xf32, #tpu.memory_space<vmem>>, %arg4: memref<8x128xf32, #tpu.memory_space<vmem>>) attributes {dimension_semantics = [#tpu.dimension_semantics<parallel>], iteration_bounds = array<i64: 2>, scalar_prefetch = 0 : i64, scratch_operands = 0 : i64, tpu.core_type = #tpu.core_type<tc>, window_params = [{transform_indices = @transform_0, window_bounds = array<i64: 8, 128>}, {pipeline_mode = #tpu.pipeline_mode<synchronous>, transform_indices = @transform_1, window_bounds = array<i64: 128, 128>}, {pipeline_mode = #tpu.pipeline_mode<synchronous>, transform_indices = @transform_2, window_bounds = array<i64: 1, 128>}, {transform_indices = @transform_3, window_bounds = array<i64: 8, 128>}]} {
    %c0 = arith.constant 0 : index
    %c0_0 = arith.constant 0 : index
    %0 = vector.load %arg1[%c0, %c0_0] : memref<8x128xf32, #tpu.memory_space<vmem>>, vector<8x128xf32>
    %1 = arith.truncf %0 : vector<8x128xf32> to vector<8x128xbf16>
    %c0_1 = arith.constant 0 : index
    %c0_2 = arith.constant 0 : index
    %2 = vector.load %arg2[%c0_1, %c0_2] : memref<128x128xbf16, #tpu.memory_space<vmem>>, vector<128x128xbf16>
    %cst = arith.constant dense<0.000000e+00> : vector<8x128xf32>
    %3 = tpu.matmul %1, %2, %cst {dimension_numbers = #tpu.dot_dimension_numbers<[1], [0], [0], [1], [0, 0, 1, 1], [], []>} : vector<8x128xbf16>, vector<128x128xbf16>, vector<8x128xf32> -> vector<8x128xf32>
    %c0_3 = arith.constant 0 : index
    %c0_4 = arith.constant 0 : index
    %4 = vector.load %arg3[%c0_3, %c0_4] : memref<1x128xf32, #tpu.memory_space<vmem>>, vector<1x128xf32>
    %5 = vector.broadcast %4 : vector<1x128xf32> to vector<8x128xf32>
    %6 = arith.addf %3, %5 : vector<8x128xf32>
    %cst_5 = arith.constant dense<0xFF800000> : vector<8xf32>
    %7 = vector.multi_reduction <maximumf>, %6, %cst_5 [1] : vector<8x128xf32> to vector<8xf32>
    %8 = vector.shape_cast %7 : vector<8xf32> to vector<8x1xf32>
    %9 = vector.broadcast %8 : vector<8x1xf32> to vector<8x128xf32>
    %10 = arith.subf %6, %9 : vector<8x128xf32>
    %11 = math.exp %10 : vector<8x128xf32>
    %cst_6 = arith.constant dense<0.000000e+00> : vector<8xf32>
    %12 = vector.multi_reduction <add>, %11, %cst_6 [1] : vector<8x128xf32> to vector<8xf32>
    %13 = vector.shape_cast %12 : vector<8xf32> to vector<8x1xf32>
    %14 = vector.broadcast %13 : vector<8x1xf32> to vector<8x128xf32>
    %15 = arith.divf %11, %14 : vector<8x128xf32>
    %c0_7 = arith.constant 0 : index
    %c0_8 = arith.constant 0 : index
    %16 = vector.load %arg4[%c0_7, %c0_8] : memref<8x128xf32, #tpu.memory_space<vmem>>, vector<8x128xf32>
    tpu.vector_store %arg4[%c0_7, %c0_8], %15 {strides = array<i32>} : memref<8x128xf32, #tpu.memory_space<vmem>>, vector<8x128xf32>,
    return
  }
  func.func @transform_0(%arg0: i32) -> (i32, i32) {
    %c0_i32 = arith.constant 0 : i32
    %c0_i32_0 = arith.constant 0 : i32
    return %arg0, %c0_i32 : i32, i32
  }
  func.func @transform_1(%arg0: i32) -> (i32, i32) {
    %c0_i32 = arith.constant 0 : i32
    %c0_i32_0 = arith.constant 0 : i32
    %c0_i32_1 = arith.constant 0 : i32
    return %c0_i32, %c0_i32_0 : i32, i32
  }
  func.func @transform_2(%arg0: i32) -> (i32, i32) {
    %c0_i32 = arith.constant 0 : i32
    %c0_i32_0 = arith.constant 0 : i32
    %c0_i32_1 = arith.constant 0 : i32
    return %c0_i32, %c0_i32_0 : i32, i32
  }
  func.func @transform_3(%arg0: i32) -> (i32, i32) {
    %c0_i32 = arith.constant 0 : i32
    %c0_i32_0 = arith.constant 0 : i32
    return %arg0, %c0_i32 : i32, i32
  }
}

</mosaic_0001>

<bundles_post_ra>
// kernel: tpu_custom_call.1
= control target key start
LH: loop header
LB: loop body
LE: loop exit
PB: predicated region body
PF: predicated region fallthrough
CT: control target
= control target key end

     0   :  { %8 = vsyncpa [#allocation3], 0  ;;  %s859_s0 = inlined_call_operand.hbm [shape: f32[16,1024], index: 0, kind: input, shape index: {}]   ;;  %s860_s1 = inlined_call_operand.hbm [shape: bf16[128,128], index: 1, kind: input, shape index: {}]   ;;  %s861_s2 = inlined_call_operand.vmem [shape: f32[1,128], index: 2, kind: input, shape index: {}]   ;;  %s862_s3 = inlined_call_operand.hbm [shape: f32[16,128], index: 3, kind: output, shape index: {}]  }
   0x1   :  { %10 = vsyncpa [#allocation3 + $0x1], 0 }
   0x2   :  { %11 = vsyncpa [#allocation6], 0 }
   0x3   :  { %12 = vsyncpa [#allocation4], 0 }
   0x4   :  { %14 = vsyncpa [#allocation4 + $0x1], 0  ;;  %s698_s12 = smov 0   ;;  %s700_s13 = smov 0  }
   0x5   :  { %s702_s14 = smov 0   ;;  %s704_s15 = smov 0  }
   0x6 LB: > { %s719_s16 = sadd.s32 4294967295, %s669_s15   ;;  %s420_s17 = sadd.s32 4294967294, %s669_s15   ;;  %s669_s15 = sphi %s704_s15, %s884_s15   ;;  %s665_s14 = sphi %s702_s14, %s883_s14   ;;  %s661_s13 = sphi %s700_s13, %s882_s13   ;;  %s657_s12 = sphi %s698_s12, %s881_s12  }
   0x7   : > { %p40_p0 = scmp.ne.s32.totalorder %s661_s13, %s657_s12  ;;  %p863_p1 = scmp.eq.s32.totalorder %s719_s16, 0 }
   0x8   : > { %p112_p3 = scmp.eq.s32.totalorder %s420_s17, 1  ;;  %p421_p5 = scmp.ge.s32.totalorder %s669_s15, 1 }
   0x9   : > { %p728_p4 = por %p863_p1, %p40_p0  ;;  %p119_p7 = scmp.lt.s32.totalorder %s669_s15, 3 }
   0xa   : > { %p733_p6 = por %p112_p3, %p40_p0  ;;  %s671_s21 = smov [#allocation5]  }
   0xb   : > { %s867_s18 = scalar_select %p728_p4, 1, 0 }
   0xc   : > { %s868_s19 = scalar_select %p733_p6, 1, 0 }
   0xd   : > { %p738_p8 = pnand %p421_p5, %p119_p7  ;;  %s131_s22 = sshll.u32 %s671_s21, 4  ;;  %s132_s22 = int_to_ptr.vmem [resolvable:$true] %s131_s22 }
   0xe   : > { %s752_s24 = sadd.s32 1, %s669_s15   ;;  %s27_s25 = sadd.s32 1, %s665_s14 }
   0xf   : > { %s869_s20 = scalar_select %p738_p8, 1, 0 }
  0x10   : > { %p482_p9 = pneg %p738_p8  ;;  %s24_s26 = ssub.s32 %s669_s15, %s752_s24 }
  0x11   : > { %s558_s27 = scalar_lea.vmem %s132_s22, 1024  ;;  %p566_p5 = scmp.lt.s32.totalorder %s132_s22, %s132_s22 }
  0x12   : > { %p747_p11 = pnand %p482_p9, %p863_p1  ;;  %p559_p13 = scmp.ne.s32.totalorder %s132_s22, %s558_s27 }
  0x13   : > { %p567_p7 = scmp.lt.s32.totalorder %s558_s27, %s558_s27 }
  0x14   : > { %p549_p12 = pneg %p747_p11 }
  0x15   : > { %p568_p10 = por %p567_p7, %p566_p5 }
  0x16   : > { %p561_p0 = pnand %p559_p13, %p549_p12 }
  0x18   : > { %p562_p3 = pneg %p561_p0 }
  0x1a   : > { %p569_p2 = pnand %p568_p10, %p562_p3 }
  0x1c   : > { %572 = shalt.err (!%p569_p2)
}
  0x1d   : > { %s672_s28 = smov 64   ;;  %s673_s29 = smov 4  }
  0x1e   : > { %485 = dma.hbm_to_vmem [thread:$0]  (!%p747_p11), %s860_s1, 1024, %s132_s22, [#allocation6], %s672_s28, %s672_s28, %s673_s29  }
  0x1f   : > { %p25_p9 = scmp.eq.s32.totalorder %s24_s26, 0  ;;  %p34_p12 = scmp.ne.s32.totalorder %s665_s14, %s661_s13 }
  0x20   : > { %p35_p10 = scmp.eq.s32.totalorder %s669_s15, 0  ;;  %p495_p2 = scmp.lt.s32.totalorder %s669_s15, 2 }
  0x21   : > { %s769_s5 = scalar_select %p25_p9, %s665_s14, %s27_s25  }
  0x22   : > { %p36_p13 = por %p35_p10, %p34_p12  ;;  %p871_p0 = scmp.eq.s32.totalorder %s719_s16, 1 }
  0x23   : > { %s148_s7 = sand.u32 1, %s665_s14   ;;  %s444_s8 = sshll.u32 %s669_s15, 10 }
  0x24   : > { %p773_p3 = por %p871_p0, %p34_p12  ;;  %s424_s9 = sshll.u32 %s148_s7, 3 }
  0x25   : > { %s782_s17 = scalar_lea.hbm %s859_s0, %s444_s8  ;;  %s152_s21 = scalar_lea.vmem [#allocation2], %s424_s9 }
  0x26   : > { %s872_s6 = scalar_select %p773_p3, 1, 0 }
  0x27   : > { %s160_s22 = sshll.u32 %s152_s21, 4  ;;  %p784_p11 = pnand %p495_p2, %p36_p13  ;;  %s161_s22 = int_to_ptr.vmem [resolvable:$true] %s160_s22 }
  0x28   : > { %s149_s25 = scalar_lea.sflag [#allocation3], %s148_s7  ;;  %s573_s26 = scalar_lea.hbm %s782_s17, 128 }
  0x29   : > { %p574_p5 = scmp.ne.s32.totalorder %s782_s17, %s573_s26  ;;  %p575_p7 = pneg %p784_p11 }
  0x2a   : > { %s578_s29 = scalar_lea.hbm %s859_s0, 2048  ;;  %p579_p10 = scmp.lt.s32.totalorder %s782_s17, %s859_s0 }
  0x2b   : > { %p576_p9 = pnand %p575_p7, %p574_p5  ;;  %p580_p2 = scmp.lt.s32.totalorder %s578_s29, %s573_s26 }
  0x2d   : > { %p577_p12 = pneg %p576_p9  ;;  %p581_p13 = por %p580_p2, %p579_p10 }
  0x2f   : > { %p582_p0 = pnand %p581_p13, %p577_p12 }
  0x31   : > { %585 = shalt.err (!%p582_p0)
}
  0x32   : > { %s586_s8 = scalar_lea.vmem %s161_s22, 128  ;;  %s674_s7 = smov [#allocation2]  }
  0x33   : > { %p587_p1 = scmp.ne.s32.totalorder %s161_s22, %s586_s8  ;;  %s591_s9 = sshll.u32 %s674_s7, 4  ;;  %s592_s9 = int_to_ptr.vmem [resolvable:$false] %s591_s9 }
  0x34   : > { %s593_s10 = scalar_lea.vmem %s592_s9, 256  ;;  %p594_p5 = scmp.lt.s32.totalorder %s161_s22, %s592_s9 }
  0x35   : > { %p589_p6 = pnand %p587_p1, %p575_p7  ;;  %p595_p9 = scmp.lt.s32.totalorder %s593_s10, %s586_s8 }
  0x37   : > { %p590_p3 = pneg %p589_p6  ;;  %p596_p4 = por %p595_p9, %p594_p5 }
  0x39   : > { %p597_p8 = pnand %p596_p4, %p590_p3 }
  0x3b   : > { %600 = shalt.err (!%p597_p8)
}
  0x3c   : > { %489 = dma.hbm_to_vmem [thread:$0]  (!%p784_p11), %s782_s17, 128, %s161_s22, %s149_s25  }
  0x3d   : > { %p874_p12 = scmp.ne.s32.totalorder %s869_s20, 0 }
  0x3e   : > { %s805_s11 = sand.u32 (!%p874_p12), 1, %s661_s13   ;;  %p875_p1 = scmp.ne.s32.totalorder (!%p874_p12), %s867_s18, 0 }
  0x3f   : > { %169 = sbr.rel (%p874_p12) target bundleno = 623 (0x26f), region = 32  ;;  %s428_s21 = sshll.u32 (!%p874_p12), %s805_s11, 3 }
  0x40   : > { %s172_s26 = scalar_lea.sflag (!%p874_p12), [#allocation3], %s805_s11  ;;  %s175_s27 = scalar_lea.vmem (!%p874_p12), [#allocation2], %s428_s21 }
  0x44   : > { %644 = dma.done.wait (%p875_p1), %s172_s26, 128  }
  0x45   : > { %646 = vsyncadd (%p875_p1), %s172_s26, 4294967168  ;;  %p876_p4 = scmp.eq.s32.totalorder %s719_s16, 0 }
  0x47   : > { %648 = dma.done.wait (%p876_p4), [#allocation6], 1024   ;;  %p877_p6 = pmov %p876_p4 }
  0x48   : > { %v675_v0 = vmov 0.0   ;;  %vm676_vm0 = vmmov 0   ;;  %v535_v1 = vld [vmem:[#allocation5 + $0x38] sm:$0xff]   ;;  %v536_v2 = vld [vmem:[#allocation5 + $0x30] sm:$0xff]   ;;  %v537_v3 = vld [vmem:[#allocation5 + $0x28] sm:$0xff]   ;;  %s441_s17 = sshll.u32 %s719_s16, 7 }
  0x49   : > { %650 = vsyncadd (%p877_p6), [#allocation6], 4294966272  ;;  %454 = vmatprep.subr.bf16.mxu0 %v675_v0  ;;  %470 = vmatprep.mubr.msk.bf16.mxu0 %vm676_vm0, %v675_v0  ;;  %v538_v4 = vld [vmem:[#allocation5 + $0x20] sm:$0xff]   ;;  %v539_v5 = vld [vmem:[#allocation5 + $0x18] sm:$0xff]   ;;  %s201_s22 = scalar_lea.vmem [#allocation7], %s428_s21  ;;  %s338_s29 = scalar_lea.hbm %s862_s3, %s441_s17 }
  0x4a   : > { %455 = vmatpush3.bf16.msra.mxu0 %v535_v1  ;;  %v540_v6 = vld [vmem:[#allocation5 + $0x10] sm:$0xff]   ;;  %v541_v7 = vld [vmem:[#allocation5 + $0x8] sm:$0xff]   ;;  %v542_v8 = vld [vmem:[#allocation5] sm:$0xff]   ;;  %s340_s23 = sshll.u32 %s201_s22, 4  ;;  %s327_s30 = scalar_lea.sflag [#allocation4], %s805_s11  ;;  %s341_s23 = int_to_ptr.vmem [resolvable:$true] %s340_s23 }
  0x4b   : > { %456 = vmatprep.subr.bf16.mxu0 %v675_v0  ;;  %v203_v9 = vld [vmem:[%s175_s27] sm:$0xff]  ;;  %s601_s4 = scalar_lea.vmem %s341_s23, 128  ;;  %p878_p3 = scmp.ne.s32.totalorder %s872_s6, 0 }
  0x4c   : > { %v204_v10 = vpack.c.bf16 %v203_v9, %v203_v9  ;;  %v431_v11 = vld [vmem:[%s861_s2] ss:$0 sm:$0xff]  ;;  %p602_p8 = scmp.ne.s32.totalorder %s341_s23, %s601_s4  ;;  %s677_s8 = smov [#allocation7]  }
  0x4d   : > { %s605_s7 = sshll.u32 %s677_s8, 4  ;;  %s606_s7 = int_to_ptr.vmem [resolvable:$false] %s605_s7 }
  0x4e   : > { %457 = vmatpush3.bf16.msra.mxu0 %v536_v2  ;;  %p603_p11 = pnand %p602_p8, %p878_p3  ;;  %s607_s16 = scalar_lea.vmem %s606_s7, 256 }
  0x4f   : > { %458 = vmatprep.subr.bf16.mxu0 %v675_v0  ;;  %p608_p10 = scmp.lt.s32.totalorder %s341_s23, %s606_s7  ;;  %p609_p2 = scmp.lt.s32.totalorder %s607_s16, %s601_s4 }
  0x50   : > { %p604_p7 = pneg %p603_p11 }
  0x51   : > { %p610_p13 = por %p609_p2, %p608_p10 }
  0x52   : > { %459 = vmatpush3.bf16.msra.mxu0 %v537_v3 }
  0x53   : > { %460 = vmatprep.subr.bf16.mxu0 %v675_v0  ;;  %p611_p0 = pnand %p610_p13, %p604_p7 }
  0x56   : > { %461 = vmatpush3.bf16.msra.mxu0 %v538_v4 }
  0x57   : > { %462 = vmatprep.subr.bf16.mxu0 %v675_v0 }
  0x5a   : > { %463 = vmatpush3.bf16.msra.mxu0 %v539_v5 }
  0x5b   : > { %464 = vmatprep.subr.bf16.mxu0 %v675_v0 }
  0x5e   : > { %465 = vmatpush3.bf16.msra.mxu0 %v540_v6 }
  0x5f   : > { %466 = vmatprep.subr.bf16.mxu0 %v675_v0 }
  0x62   : > { %467 = vmatpush3.bf16.msra.mxu0 %v541_v7 }
  0x63   : > { %468 = vmatprep.subr.bf16.mxu0 %v675_v0 }
  0x66   : > { %469 = vmatpush3.bf16.msra.mxu0 %v542_v8 }
  0x69   : > { %471 = vmatmul.mubr.bf16.vlgmr.msra.gmra.mxu0 %v204_v10 }
 0x129   : > { %v310_v12 = vpop.f32.mrf.mxu0 }
 0x12a   : > { %v311_v13 = vadd.f32 %v431_v11, %v310_v12 }
 0x12b   : > { %v472_v14 = vpop.f32.mrf.mxu0 }
 0x12c   : > { %316 = vmax.xlane.f32.xlu0 %v311_v13 }
 0x12d   : > { %v313_v15 = vpop.f32.mrf.mxu0 }
 0x12f   : > { %v473_v16 = vpop.f32.mrf.mxu0 }
 0x1b5   : > { %v317_v17 = vpop.xlane.xlu0 %316 }
 0x1b6   : > { %v318_v18 = vsub.f32 %v311_v13, %v317_v17 }
 0x1b8   : > { %v319_v19 = vmul.f32 1.442695, %v318_v18 }
 0x1ba   : > { %543 = vpow2.f32 %v319_v19 }
 0x1c7   : > { %v544_v20 = vpop.eup %543 }
 0x1c8   : > { %321 = vadd.xlane.f32.xlu0 %v544_v20 }
 0x251   : > { %v322_v21 = vpop.xlane.xlu0 %321 }
 0x252   : > { %545 = vrcp.f32 %v322_v21 }
 0x25f   : > { %v546_v22 = vpop.eup %545 }
 0x260   : > { %v324_v23 = vmul.f32 %v546_v22, %v544_v20 }
 0x262   : > { %325 = vst [vmem:[%s201_s22] sm:$0xff] %v324_v23 }
 0x263   : > { %614 = shalt.err (!%p611_p0)
}
 0x264   : > { %s615_s9 = scalar_lea.hbm %s338_s29, 128  ;;  %s619_s21 = scalar_lea.hbm %s862_s3, 256 }
 0x265   : > { %p616_p5 = scmp.ne.s32.totalorder %s338_s29, %s615_s9  ;;  %p620_p1 = scmp.lt.s32.totalorder %s338_s29, %s862_s3 }
 0x266   : > { %p621_p4 = scmp.lt.s32.totalorder %s619_s21, %s615_s9 }
 0x267   : > { %p617_p9 = pnand %p616_p5, %p878_p3 }
 0x268   : > { %p622_p6 = por %p621_p4, %p620_p1 }
 0x269   : > { %p618_p12 = pneg %p617_p9 }
 0x26b   : > { %p623_p8 = pnand %p622_p6, %p618_p12 }
 0x26d   : > { %626 = shalt.err (!%p623_p8)
}
 0x26e   : > { %480 = dma.vmem_to_hbm [thread:$0]  (%p878_p3), %s341_s23, 128, %s338_s29, %s327_s30  }
 0x26f PF: > { %s352_s18 = sand.u32 1, %s657_s12   ;;  %p879_p11 = scmp.ne.s32.totalorder %s868_s19, 0 }
 0x270   : > { %p880_p7 = scmp.ge.s32.totalorder %s669_s15, 2  ;;  %s353_s20 = scalar_lea.sflag [#allocation4], %s352_s18 }
 0x272   : > { %p491_p10 = pnand %p880_p7, %p879_p11 }
 0x274   : > { %p492_p2 = pneg %p491_p10 }
 0x276   : > { %652 = dma.done.wait (%p492_p2), %s353_s20, 128  }
 0x277   : > { %654 = vsyncadd (%p492_p2), %s353_s20, 4294967168  ;;  %p17_p13 = scmp.ge.s32.totalorder %s752_s24, 4   ;;  %s881_s12 = smov %s661_s13 }
 0x278   : > { %s882_s13 = smov %s665_s14  ;;  %s883_s14 = smov %s769_s5 }
 0x279   : > { %s884_s15 = smov %s752_s24  ;;  %19 = sbr.rel (!%p17_p13) target bundleno = 6 (0x6), region = 81 }
 0x27e   :  { %358 = vsyncpa [#allocation3], 1 }
 0x27f   :  { %360 = vsyncpa [#allocation3 + $0x1], 1 }
 0x280   :  { %361 = vsyncpa [#allocation6], 1 }
 0x281   :  { %362 = vsyncpa [#allocation4], 1 }
 0x282   :  { %364 = vsyncpa [#allocation4 + $0x1], 1 }

</bundles_post_ra>
